<compile_context>
chip_gen: v7x
topology: tpu7x:2x2x1
jax: 0.10.0
libtpu: 0.0.40
codegen_flags: <defaults>
</compile_context>

<pallas_src>
import jax
import jax.numpy as jnp
from jax.experimental import pallas as pl
from jax.experimental.pallas import tpu as pltpu

D_IN = 64
H1, H2, NUM_CLASSES = 15, 10, 10
LANE = 128
H1P, H2P, H3P = LANE, LANE, LANE          # 15 -> 128, 10 -> 128, 10 -> 128 (padded)
BN_EPS = 1e-5
_NEG = -1e30


def classifier_kernel(x_ref, w1_ref, b1_ref, w2_ref, b2_ref, w3_ref, b3_ref, o_ref):
    # layer 1: (TB, 64) @ (64, 128) + bias -> relu  (BN folded into W/b)
    h = jnp.dot(x_ref[...], w1_ref[...], preferred_element_type=jnp.float32)
    h = jnp.maximum(h + b1_ref[...], 0.0)
    # layer 2: (TB, 128) @ (128, 128) + bias -> relu (padded cols stay exactly 0)
    h = jnp.dot(h, w2_ref[...], preferred_element_type=jnp.float32)
    h = jnp.maximum(h + b2_ref[...], 0.0)
    # layer 3 + softmax over the real NUM_CLASSES columns
    z = jnp.dot(h, w3_ref[...], preferred_element_type=jnp.float32) + b3_ref[...]
    col = jax.lax.broadcasted_iota(jnp.int32, z.shape, 1)
    z = jnp.where(col < NUM_CLASSES, z, _NEG)            # mask padded classes
    z = z - jnp.max(z, axis=-1, keepdims=True)
    e = jnp.exp(z)
    o_ref[...] = (e / jnp.sum(e, axis=-1, keepdims=True)).astype(o_ref.dtype)


def _round_up(x, m):
    return ((x + m - 1) // m) * m


def _fold_bn(w, b, gamma, beta, mean, var, eps=BN_EPS):
    """Fold eval-mode BatchNorm1d into a Linear; returns (in,out) weight + bias."""
    s = gamma / jnp.sqrt(var + eps)          # (out,)
    w_eff = (w * s[:, None]).T               # PyTorch w is (out, in) -> (in, out)
    b_eff = (b - mean) * s + beta            # (out,)
    return w_eff, b_eff


def _pad2(a, shape):
    out = jnp.zeros(shape, a.dtype)
    return out.at[: a.shape[0], : a.shape[1]].set(a)


def fold_and_pad(p):
    w1, b1 = _fold_bn(p["l1_w"], p["l1_b"], p["bn1_g"], p["bn1_b"], p["bn1_m"], p["bn1_v"])
    w2, b2 = _fold_bn(p["l2_w"], p["l2_b"], p["bn2_g"], p["bn2_b"], p["bn2_m"], p["bn2_v"])
    w3, b3 = _fold_bn(p["l3_w"], p["l3_b"], p["bn3_g"], p["bn3_b"], p["bn3_m"], p["bn3_v"])
    return {
        "w1": _pad2(w1, (D_IN, H1P)), "b1": _pad2(b1[None, :], (1, H1P)),
        "w2": _pad2(w2, (H1P, H2P)),  "b2": _pad2(b2[None, :], (1, H2P)),
        "w3": _pad2(w3, (H2P, H3P)),  "b3": _pad2(b3[None, :], (1, H3P)),
    }


def classifier_forward(x, params, *, tile_b=256):
    """x: sequence whose first element is `encoded` of shape (B, 64); x[1] is ignored.
    params: raw PyTorch-style parameter dict (see init_params).
    Returns softmax class probabilities of shape (B, 10)."""
    encoded = x[0]
    B = encoded.shape[0]
    fp = fold_and_pad(params)

    tb = min(tile_b, _round_up(B, 8))
    grid = (pl.cdiv(B, tb),)

    x_spec = pl.BlockSpec((tb, D_IN), lambda i: (i, 0))
    out_spec = pl.BlockSpec((tb, H3P), lambda i: (i, 0))
    # constant index_map -> weights stay resident in VMEM across batch tiles
    const = lambda shape: pl.BlockSpec(shape, lambda i: (0, 0))

    flops = 2 * B * (D_IN * H1 + H1 * H2 + H2 * NUM_CLASSES)
    bytes_accessed = 4 * (encoded.size + B * H3P + sum(int(v.size) for v in fp.values()))

    out_padded = pl.pallas_call(
        classifier_kernel,
        out_shape=jax.ShapeDtypeStruct((B, H3P), jnp.float32),
        grid=grid,
        in_specs=[
            x_spec,
            const(fp["w1"].shape), const(fp["b1"].shape),
            const(fp["w2"].shape), const(fp["b2"].shape),
            const(fp["w3"].shape), const(fp["b3"].shape),
        ],
        out_specs=out_spec,
        compiler_params=pltpu.CompilerParams(dimension_semantics=("parallel",)),
        cost_estimate=pl.CostEstimate(
            flops=flops,
            transcendentals=B * NUM_CLASSES,
            bytes_accessed=bytes_accessed,
        ),
    )(encoded, fp["w1"], fp["b1"], fp["w2"], fp["b2"], fp["w3"], fp["b3"])

    return out_padded[:, :NUM_CLASSES]


def init_params(key):
    """Deterministic synthetic params matching the nn.Module shapes."""
    ks = iter(jax.random.split(key, 24))

    def u(shape, fan_in):
        bound = 1.0 / float(fan_in) ** 0.5
        return jax.random.uniform(next(ks), shape, jnp.float32, -bound, bound)

    def bn(n):
        return {
            "g": 1.0 + 0.1 * jax.random.normal(next(ks), (n,), jnp.float32),
            "b": 0.1 * jax.random.normal(next(ks), (n,), jnp.float32),
            "m": 0.1 * jax.random.normal(next(ks), (n,), jnp.float32),
            "v": jax.random.uniform(next(ks), (n,), jnp.float32, 0.5, 1.5),
        }

    bn1, bn2, bn3 = bn(H1), bn(H2), bn(NUM_CLASSES)
    return {
        "l1_w": u((H1, D_IN), D_IN),        "l1_b": u((H1,), D_IN),
        "l2_w": u((H2, H1), H1),            "l2_b": u((H2,), H1),
        "l3_w": u((NUM_CLASSES, H2), H2),   "l3_b": u((NUM_CLASSES,), H2),
        "bn1_g": bn1["g"], "bn1_b": bn1["b"], "bn1_m": bn1["m"], "bn1_v": bn1["v"],
        "bn2_g": bn2["g"], "bn2_b": bn2["b"], "bn2_m": bn2["m"], "bn2_v": bn2["v"],
        "bn3_g": bn3["g"], "bn3_b": bn3["b"], "bn3_m": bn3["m"], "bn3_v": bn3["v"],
    }


def reference(encoded, p, eps=BN_EPS):
    """Pure-JAX reference matching the PyTorch forward (eval-mode BN)."""
    def bn(x, g, b, m, v):
        return (x - m) / jnp.sqrt(v + eps) * g + b

    h = encoded @ p["l1_w"].T + p["l1_b"]
    h = jnp.maximum(bn(h, p["bn1_g"], p["bn1_b"], p["bn1_m"], p["bn1_v"]), 0.0)
    h = h @ p["l2_w"].T + p["l2_b"]
    h = jnp.maximum(bn(h, p["bn2_g"], p["bn2_b"], p["bn2_m"], p["bn2_v"]), 0.0)
    z = h @ p["l3_w"].T + p["l3_b"]
    z = bn(z, p["bn3_g"], p["bn3_b"], p["bn3_m"], p["bn3_v"])
    return jax.nn.softmax(z, axis=1)


if __name__ == "__main__":
    key = jax.random.PRNGKey(0)
    kx, kd, kp = jax.random.split(key, 3)
    B = 8
    encoded = jax.random.normal(kx, (B, D_IN), dtype=jnp.float32)
    dummy = jax.random.normal(kd, (B, D_IN), dtype=jnp.float32)  # forward ignores x[1]
    params = init_params(kp)

    out = classifier_forward((encoded, dummy), params)
    out = jax.block_until_ready(out)

    ref = reference(encoded, params)
    assert out.shape == (B, NUM_CLASSES), out.shape
    assert jnp.allclose(out, ref, atol=1e-5, rtol=1e-5), (out, ref)
    assert jnp.allclose(jnp.sum(out, axis=1), 1.0, atol=1e-5)
    print("KERNEL_OK")
</pallas_src>

<mosaic_0001>
module attributes {stable_mosaic.version = 11 : i64} {
  func.func @classifier_kernel(%arg0: i32, %arg1: memref<8x64xf32, #tpu.memory_space<vmem>>, %arg2: memref<64x128xf32, #tpu.memory_space<vmem>>, %arg3: memref<1x128xf32, #tpu.memory_space<vmem>>, %arg4: memref<128x128xf32, #tpu.memory_space<vmem>>, %arg5: memref<1x128xf32, #tpu.memory_space<vmem>>, %arg6: memref<128x128xf32, #tpu.memory_space<vmem>>, %arg7: memref<1x128xf32, #tpu.memory_space<vmem>>, %arg8: memref<8x128xf32, #tpu.memory_space<vmem>>) attributes {dimension_semantics = [#tpu.dimension_semantics<parallel>], iteration_bounds = array<i64: 1>, scalar_prefetch = 0 : i64, scratch_operands = 0 : i64, tpu.core_type = #tpu.core_type<tc>, window_params = [{transform_indices = @transform_0, window_bounds = array<i64: 8, 64>}, {pipeline_mode = #tpu.pipeline_mode<synchronous>, transform_indices = @transform_1, window_bounds = array<i64: 64, 128>}, {pipeline_mode = #tpu.pipeline_mode<synchronous>, transform_indices = @transform_2, window_bounds = array<i64: 1, 128>}, {pipeline_mode = #tpu.pipeline_mode<synchronous>, transform_indices = @transform_3, window_bounds = array<i64: 128, 128>}, {pipeline_mode = #tpu.pipeline_mode<synchronous>, transform_indices = @transform_4, window_bounds = array<i64: 1, 128>}, {pipeline_mode = #tpu.pipeline_mode<synchronous>, transform_indices = @transform_5, window_bounds = array<i64: 128, 128>}, {pipeline_mode = #tpu.pipeline_mode<synchronous>, transform_indices = @transform_6, window_bounds = array<i64: 1, 128>}, {transform_indices = @transform_7, window_bounds = array<i64: 8, 128>}]} {
    %c0 = arith.constant 0 : index
    %c0_0 = arith.constant 0 : index
    %0 = vector.load %arg1[%c0, %c0_0] : memref<8x64xf32, #tpu.memory_space<vmem>>, vector<8x64xf32>
    %c0_1 = arith.constant 0 : index
    %c0_2 = arith.constant 0 : index
    %1 = vector.load %arg2[%c0_1, %c0_2] : memref<64x128xf32, #tpu.memory_space<vmem>>, vector<64x128xf32>
    %cst = arith.constant dense<0.000000e+00> : vector<8x128xf32>
    %2 = tpu.matmul %0, %1, %cst {dimension_numbers = #tpu.dot_dimension_numbers<[1], [0], [0], [1], [0, 0, 1, 1], [], []>} : vector<8x64xf32>, vector<64x128xf32>, vector<8x128xf32> -> vector<8x128xf32>
    %c0_3 = arith.constant 0 : index
    %c0_4 = arith.constant 0 : index
    %3 = vector.load %arg3[%c0_3, %c0_4] : memref<1x128xf32, #tpu.memory_space<vmem>>, vector<1x128xf32>
    %4 = vector.broadcast %3 : vector<1x128xf32> to vector<8x128xf32>
    %5 = arith.addf %2, %4 : vector<8x128xf32>
    %cst_5 = arith.constant 0.000000e+00 : f32
    %6 = vector.broadcast %cst_5 : f32 to vector<8x128xf32>
    %7 = arith.maximumf %5, %6 : vector<8x128xf32>
    %c0_6 = arith.constant 0 : index
    %c0_7 = arith.constant 0 : index
    %8 = vector.load %arg4[%c0_6, %c0_7] : memref<128x128xf32, #tpu.memory_space<vmem>>, vector<128x128xf32>
    %cst_8 = arith.constant dense<0.000000e+00> : vector<8x128xf32>
    %9 = tpu.matmul %7, %8, %cst_8 {dimension_numbers = #tpu.dot_dimension_numbers<[1], [0], [0], [1], [0, 0, 1, 1], [], []>} : vector<8x128xf32>, vector<128x128xf32>, vector<8x128xf32> -> vector<8x128xf32>
    %c0_9 = arith.constant 0 : index
    %c0_10 = arith.constant 0 : index
    %10 = vector.load %arg5[%c0_9, %c0_10] : memref<1x128xf32, #tpu.memory_space<vmem>>, vector<1x128xf32>
    %11 = vector.broadcast %10 : vector<1x128xf32> to vector<8x128xf32>
    %12 = arith.addf %9, %11 : vector<8x128xf32>
    %cst_11 = arith.constant 0.000000e+00 : f32
    %13 = vector.broadcast %cst_11 : f32 to vector<8x128xf32>
    %14 = arith.maximumf %12, %13 : vector<8x128xf32>
    %c0_12 = arith.constant 0 : index
    %c0_13 = arith.constant 0 : index
    %15 = vector.load %arg6[%c0_12, %c0_13] : memref<128x128xf32, #tpu.memory_space<vmem>>, vector<128x128xf32>
    %cst_14 = arith.constant dense<0.000000e+00> : vector<8x128xf32>
    %16 = tpu.matmul %14, %15, %cst_14 {dimension_numbers = #tpu.dot_dimension_numbers<[1], [0], [0], [1], [0, 0, 1, 1], [], []>} : vector<8x128xf32>, vector<128x128xf32>, vector<8x128xf32> -> vector<8x128xf32>
    %c0_15 = arith.constant 0 : index
    %c0_16 = arith.constant 0 : index
    %17 = vector.load %arg7[%c0_15, %c0_16] : memref<1x128xf32, #tpu.memory_space<vmem>>, vector<1x128xf32>
    %18 = vector.broadcast %17 : vector<1x128xf32> to vector<8x128xf32>
    %19 = arith.addf %16, %18 : vector<8x128xf32>
    %20 = tpu.iota {dimensions = array<i32: 1>} : vector<8x128xi32>
    %c10_i32 = arith.constant 10 : i32
    %21 = vector.broadcast %c10_i32 : i32 to vector<8x128xi32>
    %22 = arith.cmpi slt, %20, %21 : vector<8x128xi32>
    %cst_17 = arith.constant -1.000000e+30 : f32
    %23 = vector.broadcast %cst_17 : f32 to vector<8x128xf32>
    %24 = arith.select %22, %19, %23 : vector<8x128xi1>, vector<8x128xf32>
    %cst_18 = arith.constant dense<0xFF800000> : vector<8xf32>
    %25 = vector.multi_reduction <maximumf>, %24, %cst_18 [1] : vector<8x128xf32> to vector<8xf32>
    %26 = vector.shape_cast %25 : vector<8xf32> to vector<8x1xf32>
    %27 = vector.broadcast %26 : vector<8x1xf32> to vector<8x128xf32>
    %28 = arith.subf %24, %27 : vector<8x128xf32>
    %29 = math.exp %28 : vector<8x128xf32>
    %cst_19 = arith.constant dense<0.000000e+00> : vector<8xf32>
    %30 = vector.multi_reduction <add>, %29, %cst_19 [1] : vector<8x128xf32> to vector<8xf32>
    %31 = vector.shape_cast %30 : vector<8xf32> to vector<8x1xf32>
    %32 = vector.broadcast %31 : vector<8x1xf32> to vector<8x128xf32>
    %33 = arith.divf %29, %32 : vector<8x128xf32>
    %c0_20 = arith.constant 0 : index
    %c0_21 = arith.constant 0 : index
    %34 = vector.load %arg8[%c0_20, %c0_21] : memref<8x128xf32, #tpu.memory_space<vmem>>, vector<8x128xf32>
    tpu.vector_store %arg8[%c0_20, %c0_21], %33 {strides = array<i32>} : memref<8x128xf32, #tpu.memory_space<vmem>>, vector<8x128xf32>,
    return
  }
  func.func @transform_0(%arg0: i32) -> (i32, i32) {
    %c0_i32 = arith.constant 0 : i32
    %c0_i32_0 = arith.constant 0 : i32
    return %arg0, %c0_i32 : i32, i32
  }
  func.func @transform_1(%arg0: i32) -> (i32, i32) {
    %c0_i32 = arith.constant 0 : i32
    %c0_i32_0 = arith.constant 0 : i32
    %c0_i32_1 = arith.constant 0 : i32
    return %c0_i32, %c0_i32_0 : i32, i32
  }
  func.func @transform_2(%arg0: i32) -> (i32, i32) {
    %c0_i32 = arith.constant 0 : i32
    %c0_i32_0 = arith.constant 0 : i32
    %c0_i32_1 = arith.constant 0 : i32
    return %c0_i32, %c0_i32_0 : i32, i32
  }
  func.func @transform_3(%arg0: i32) -> (i32, i32) {
    %c0_i32 = arith.constant 0 : i32
    %c0_i32_0 = arith.constant 0 : i32
    %c0_i32_1 = arith.constant 0 : i32
    return %c0_i32, %c0_i32_0 : i32, i32
  }
  func.func @transform_4(%arg0: i32) -> (i32, i32) {
    %c0_i32 = arith.constant 0 : i32
    %c0_i32_0 = arith.constant 0 : i32
    %c0_i32_1 = arith.constant 0 : i32
    return %c0_i32, %c0_i32_0 : i32, i32
  }
  func.func @transform_5(%arg0: i32) -> (i32, i32) {
    %c0_i32 = arith.constant 0 : i32
    %c0_i32_0 = arith.constant 0 : i32
    %c0_i32_1 = arith.constant 0 : i32
    return %c0_i32, %c0_i32_0 : i32, i32
  }
  func.func @transform_6(%arg0: i32) -> (i32, i32) {
    %c0_i32 = arith.constant 0 : i32
    %c0_i32_0 = arith.constant 0 : i32
    %c0_i32_1 = arith.constant 0 : i32
    return %c0_i32, %c0_i32_0 : i32, i32
  }
  func.func @transform_7(%arg0: i32) -> (i32, i32) {
    %c0_i32 = arith.constant 0 : i32
    %c0_i32_0 = arith.constant 0 : i32
    return %arg0, %c0_i32 : i32, i32
  }
}

</mosaic_0001>

<bundles_post_ra>
// kernel: tpu_custom_call.1
= control target key start
LH: loop header
LB: loop body
LE: loop exit
PB: predicated region body
PF: predicated region fallthrough
CT: control target
= control target key end

     0   :  { %12 = vsyncpa [#allocation3], 0  ;;  %s868_s0 = inlined_call_operand.hbm [shape: f32[8,64], index: 0, kind: input, shape index: {}]   ;;  %s869_s1 = inlined_call_operand.hbm [shape: f32[64,128], index: 1, kind: input, shape index: {}]   ;;  %s870_s2 = inlined_call_operand.vmem [shape: f32[1,128], index: 2, kind: input, shape index: {}]   ;;  %s871_s3 = inlined_call_operand.hbm [shape: f32[128,128], index: 3, kind: input, shape index: {}]   ;;  %s872_s4 = inlined_call_operand.vmem [shape: f32[1,128], index: 4, kind: input, shape index: {}]   ;;  %s873_s5 = inlined_call_operand.hbm [shape: f32[128,128], index: 5, kind: input, shape index: {}]   ;;  %s874_s6 = inlined_call_operand.vmem [shape: f32[1,128], index: 6, kind: input, shape index: {}]   ;;  %s875_s7 = inlined_call_operand.hbm [shape: f32[8,128], index: 7, kind: output, shape index: {}]  }
   0x1   :  { %13 = vsyncpa [#allocation6], 0 }
   0x2   :  { %14 = vsyncpa [#allocation9], 0 }
   0x3   :  { %15 = vsyncpa [#allocation4], 0  ;;  %s717_s24 = smov [#allocation5]   ;;  %s599_s28 = scalar_lea.hbm %s869_s1, 1024 }
   0x4   :  { %s31_s25 = sshll.u32 %s717_s24, 4  ;;  %p600_p0 = scmp.ne.s32.totalorder %s869_s1, %s599_s28  ;;  %s32_s25 = int_to_ptr.vmem [resolvable:$true] %s31_s25 }
   0x5   :  { %p603_p1 = scmp.lt.u32.totalorder %s599_s28, %s869_s1 }
   0x7   :  { %p605_p2 = pnand %p603_p1, %p600_p0 }
   0x9   :  { %608 = shalt.err (!%p605_p2)
}
   0xa   :  { %s609_s10 = scalar_lea.vmem %s32_s25, 1024  ;;  %p614_p4 = scmp.lt.s32.totalorder %s32_s25, %s32_s25 }
   0xb   :  { %p610_p3 = scmp.ne.s32.totalorder %s32_s25, %s609_s10  ;;  %p615_p5 = scmp.lt.s32.totalorder %s609_s10, %s609_s10 }
   0xd   :  { %p616_p6 = por %p615_p5, %p614_p4 }
   0xf   :  { %p617_p7 = pnand %p616_p6, %p610_p3 }
  0x11   :  { %620 = shalt.err (!%p617_p7)
}
  0x12   :  { %s718_s11 = smov 128   ;;  %s719_s12 = smov 8  }
  0x13   :  { %37 = dma.hbm_to_vmem [thread:$0]  %s869_s1, 1024, %s32_s25, [#allocation6], %s718_s11, %s718_s11, %s719_s12  }
  0x14   :  { %s720_s15 = smov [#allocation2]   ;;  %s721_s17 = smov [#allocation7]  }
  0x15   :  { %s22_s16 = sshll.u32 %s720_s15, 4  ;;  %s45_s18 = sshll.u32 %s721_s17, 4  ;;  %s23_s16 = int_to_ptr.vmem [resolvable:$true] %s22_s16  ;;  %s46_s18 = int_to_ptr.vmem [resolvable:$true] %s45_s18 }
  0x16   :  { %s621_s21 = scalar_lea.hbm %s868_s0, 128 }
  0x17   :  { %p622_p8 = scmp.ne.s32.totalorder %s868_s0, %s621_s21  ;;  %p625_p9 = scmp.lt.u32.totalorder %s621_s21, %s868_s0 }
  0x19   :  { %p627_p10 = pnand %p625_p9, %p622_p8 }
  0x1b   :  { %630 = shalt.err (!%p627_p10)
}
  0x1c   :  { %s631_s1 = scalar_lea.vmem %s23_s16, 128  ;;  %p636_p12 = scmp.lt.s32.totalorder %s23_s16, %s23_s16 }
  0x1d   :  { %p632_p11 = scmp.ne.s32.totalorder %s23_s16, %s631_s1  ;;  %p637_p13 = scmp.lt.s32.totalorder %s631_s1, %s631_s1 }
  0x1f   :  { %p638_p0 = por %p637_p13, %p636_p12 }
  0x21   :  { %p639_p1 = pnand %p638_p0, %p632_p11 }
  0x23   :  { %642 = shalt.err (!%p639_p1)
}
  0x24   :  { %25 = dma.hbm_to_vmem [thread:$0]  %s868_s0, 128, %s23_s16, [#allocation3]  }
  0x25   :  { %s643_s30 = scalar_lea.hbm %s871_s3, 2048 }
  0x26   :  { %p644_p2 = scmp.ne.s32.totalorder %s871_s3, %s643_s30  ;;  %p647_p3 = scmp.lt.u32.totalorder %s643_s30, %s871_s3 }
  0x28   :  { %p649_p4 = pnand %p647_p3, %p644_p2 }
  0x2a   :  { %652 = shalt.err (!%p649_p4)
}
  0x2b   :  { %s653_s14 = scalar_lea.vmem %s46_s18, 2048  ;;  %p658_p6 = scmp.lt.s32.totalorder %s46_s18, %s46_s18 }
  0x2c   :  { %p654_p5 = scmp.ne.s32.totalorder %s46_s18, %s653_s14  ;;  %p659_p7 = scmp.lt.s32.totalorder %s653_s14, %s653_s14 }
  0x2e   :  { %p660_p8 = por %p659_p7, %p658_p6 }
  0x30   :  { %p661_p9 = pnand %p660_p8, %p654_p5 }
  0x32   :  { %664 = shalt.err (!%p661_p9)
}
  0x33   :  { %51 = dma.hbm_to_vmem [thread:$0]  %s871_s3, 2048, %s46_s18, [#allocation6], %s718_s11, %s718_s11, %s719_s12  }
  0x34   :  { %s722_s16 = smov [#allocation8]   ;;  %s665_s21 = scalar_lea.hbm %s873_s5, 2048 }
  0x35   :  { %s59_s17 = sshll.u32 %s722_s16, 4  ;;  %p666_p10 = scmp.ne.s32.totalorder %s873_s5, %s665_s21  ;;  %s60_s17 = int_to_ptr.vmem [resolvable:$true] %s59_s17 }
  0x36   :  { %p669_p11 = scmp.lt.u32.totalorder %s665_s21, %s873_s5 }
  0x38   :  { %p671_p12 = pnand %p669_p11, %p666_p10 }
  0x3a   :  { %674 = shalt.err (!%p671_p12)
}
  0x3b   :  { %s675_s1 = scalar_lea.vmem %s60_s17, 2048  ;;  %p680_p0 = scmp.lt.s32.totalorder %s60_s17, %s60_s17 }
  0x3c   :  { %p676_p13 = scmp.ne.s32.totalorder %s60_s17, %s675_s1  ;;  %p681_p1 = scmp.lt.s32.totalorder %s675_s1, %s675_s1 }
  0x3e   :  { %p682_p2 = por %p681_p1, %p680_p0 }
  0x40   :  { %p683_p3 = pnand %p682_p2, %p676_p13 }
  0x42   :  { %686 = shalt.err (!%p683_p3)
}
  0x43   :  { %65 = dma.hbm_to_vmem [thread:$0]  %s873_s5, 2048, %s60_s17, [#allocation9], %s718_s11, %s718_s11, %s719_s12  }
  0x44   :  { %709 = dma.done.wait [#allocation3], 128  }
  0x45   :  { %710 = vsyncadd [#allocation3], 4294967168 }
  0x46   :  { %711 = dma.done.wait [#allocation6], 3072  }
  0x47   :  { %712 = vsyncadd [#allocation6], 4294964224 }
  0x48   :  { %713 = dma.done.wait [#allocation9], 2048  }
  0x49   :  { %714 = vsyncadd [#allocation9], 4294965248  ;;  %v723_v0 = vmov 0.0|0.0   ;;  %vm724_vm0 = vmmov 0   ;;  %v725_v1 = vmov 0.0   ;;  %v81_v2 = vld [vmem:[#allocation5] sm:$0xff] }
  0x4a   :  { %525 = vmatprep.subr.bf16.mxu0 %v723_v0  ;;  %452 = vmatprep.mubr.msk.f32.mxu0 %vm724_vm0, %v725_v1  ;;  %v82_v3 = vld [vmem:[#allocation5 + $0x8] sm:$0xff]  ;;  %v83_v4 = vld [vmem:[#allocation5 + $0x10] sm:$0xff]  ;;  %v84_v6 = vld [vmem:[#allocation5 + $0x18] sm:$0xff]  ;;  %vm96_vm1 = vcmask 523264  }
  0x4b   :  { %537 = vmatprep.subr.bf16.mxu1 %v723_v0  ;;  %487 = vmatprep.mubr.msk.f32.mxu1 %vm724_vm0, %v725_v1  ;;  %v526_v5 = vpack.c.bf16 %v82_v3, %v81_v2  ;;  %v529_v7 = vpack.c.bf16 %v84_v6, %v83_v4  ;;  %v171_v8 = vld [vmem:[#allocation7] sm:$0xff]  ;;  %v172_v9 = vld [vmem:[#allocation7 + $0x8] sm:$0xff]  ;;  %v173_v10 = vld [vmem:[#allocation7 + $0x10] sm:$0xff] }
  0x4c   :  { %v85_v11 = vld [vmem:[#allocation5 + $0x20] sm:$0xff]  ;;  %v86_v12 = vld [vmem:[#allocation5 + $0x28] sm:$0xff]  ;;  %v538_v13 = vpack.c.bf16 %v172_v9, %v171_v8  ;;  %v174_v14 = vld [vmem:[#allocation7 + $0x18] sm:$0xff]  ;;  %v358_v9 = vlaneseq }
  0x4d   :  { %527 = vmatpush3.bf16.msra.mxu0 %v526_v5  ;;  %v541_v15 = vpack.c.bf16 %v174_v14, %v173_v10  ;;  %v532_v16 = vpack.c.bf16 %v86_v12, %v85_v11  ;;  %v175_v17 = vld [vmem:[#allocation7 + $0x20] sm:$0xff]  ;;  %v176_v18 = vld [vmem:[#allocation7 + $0x28] sm:$0xff]  ;;  %v87_v19 = vld [vmem:[#allocation5 + $0x30] sm:$0xff] }
  0x4e   :  { %528 = vmatprep.subr.bf16.mxu0 %v723_v0  ;;  %539 = vmatpush3.bf16.msra.mxu1 %v538_v13  ;;  %v88_v20 = vld [vmem:[#allocation5 + $0x38] sm:$0xff]  ;;  %v544_v21 = vpack.c.bf16 %v176_v18, %v175_v17  ;;  %v177_v23 = vld [vmem:[#allocation7 + $0x30] sm:$0xff]  ;;  %v179_v27 = vld [vmem:[#allocation7 + $0x40] sm:$0xff]  ;;  %v359_v10 = vand.u32 127, %v358_v9 }
  0x4f   :  { %540 = vmatprep.subr.bf16.mxu1 %v723_v0  ;;  %v535_v22 = vpack.c.bf16 %v88_v20, %v87_v19  ;;  %v178_v24 = vld [vmem:[#allocation7 + $0x38] sm:$0xff]  ;;  %v180_v28 = vld [vmem:[#allocation7 + $0x48] sm:$0xff]  ;;  %v181_v30 = vld [vmem:[#allocation7 + $0x50] sm:$0xff] }
  0x50   :  { %v547_v25 = vpack.c.bf16 %v178_v24, %v177_v23  ;;  %v80_v26 = vld [vmem:[#allocation2] sm:$0xff]  ;;  %v550_v29 = vpack.c.bf16 %v180_v28, %v179_v27  ;;  %v183_v33 = vld [vmem:[#allocation7 + $0x60] sm:$0xff]  ;;  %v184_v34 = vld [vmem:[#allocation7 + $0x68] sm:$0xff]  ;;  %vm360_vm2 = vcmp.lt.s32.totalorder %v359_v10, 10 }
  0x51   :  { %530 = vmatpush3.bf16.msra.mxu0 %v529_v7  ;;  %v182_v31 = vld [vmem:[#allocation7 + $0x58] sm:$0xff]  ;;  %v556_v35 = vpack.c.bf16 %v184_v34, %v183_v33  ;;  %v185_v36 = vld [vmem:[#allocation7 + $0x70] sm:$0xff]  ;;  %v265_v39 = vld [vmem:[#allocation8] sm:$0xff] }
  0x52   :  { %531 = vmatprep.subr.bf16.mxu0 %v723_v0  ;;  %542 = vmatpush3.bf16.msra.mxu1 %v541_v15  ;;  %v553_v32 = vpack.c.bf16 %v182_v31, %v181_v30  ;;  %v186_v37 = vld [vmem:[#allocation7 + $0x78] sm:$0xff]  ;;  %v266_v40 = vld [vmem:[#allocation8 + $0x8] sm:$0xff]  ;;  %v267_v41 = vld [vmem:[#allocation8 + $0x10] sm:$0xff] }
  0x53   :  { %543 = vmatprep.subr.bf16.mxu1 %v723_v0  ;;  %v559_v38 = vpack.c.bf16 %v186_v37, %v185_v36  ;;  %v562_v42 = vpack.c.bf16 %v266_v40, %v265_v39  ;;  %v268_v43 = vld [vmem:[#allocation8 + $0x18] sm:$0xff]  ;;  %v269_v45 = vld [vmem:[#allocation8 + $0x20] sm:$0xff]  ;;  %v270_v46 = vld [vmem:[#allocation8 + $0x28] sm:$0xff] }
  0x54   :  { %v565_v44 = vpack.c.bf16 %v268_v43, %v267_v41  ;;  %v568_v47 = vpack.c.bf16 %v270_v46, %v269_v45  ;;  %v271_v48 = vld [vmem:[#allocation8 + $0x30] sm:$0xff]  ;;  %v272_v49 = vld [vmem:[#allocation8 + $0x38] sm:$0xff]  ;;  %v273_v51 = vld [vmem:[#allocation8 + $0x40] sm:$0xff] }
  0x55   :  { %533 = vmatpush3.bf16.msra.mxu0 %v532_v16  ;;  %v571_v50 = vpack.c.bf16 %v272_v49, %v271_v48  ;;  %v274_v52 = vld [vmem:[#allocation8 + $0x48] sm:$0xff]  ;;  %v275_v54 = vld [vmem:[#allocation8 + $0x50] sm:$0xff]  ;;  %v276_v55 = vld [vmem:[#allocation8 + $0x58] sm:$0xff] }
  0x56   :  { %534 = vmatprep.subr.bf16.mxu0 %v723_v0  ;;  %545 = vmatpush3.bf16.msra.mxu1 %v544_v21  ;;  %v574_v53 = vpack.c.bf16 %v274_v52, %v273_v51  ;;  %v577_v56 = vpack.c.bf16 %v276_v55, %v275_v54  ;;  %v277_v57 = vld [vmem:[#allocation8 + $0x60] sm:$0xff]  ;;  %v278_v58 = vld [vmem:[#allocation8 + $0x68] sm:$0xff]  ;;  %v389_v60 = vld [vmem:[%s870_s2] ss:$0 sm:$0xff] }
  0x57   :  { %546 = vmatprep.subr.bf16.mxu1 %v723_v0  ;;  %v580_v59 = vpack.c.bf16 %v278_v58, %v277_v57  ;;  %v279_v2 = vld [vmem:[#allocation8 + $0x70] sm:$0xff]  ;;  %v280_v3 = vld [vmem:[#allocation8 + $0x78] sm:$0xff] }
  0x58   :  { %v583_v4 = vpack.c.bf16 %v280_v3, %v279_v2  ;;  %v391_v5 = vld [vmem:[%s872_s4] ss:$0 sm:$0xff]  ;;  %s726_s4 = smov [#allocation10]  }
  0x59   :  { %536 = vmatpush3.bf16.msra.mxu0 %v535_v22  ;;  %v392_v11 = vld [vmem:[%s874_s6] ss:$0 sm:$0xff]  ;;  %s378_s28 = sshll.u32 %s726_s4, 4  ;;  %s379_s28 = int_to_ptr.vmem [resolvable:$true] %s378_s28 }
  0x5a   :  { %561 = vmatprep.subr.bf16.mxu0 %v723_v0  ;;  %548 = vmatpush3.bf16.msra.mxu1 %v547_v25  ;;  %s687_s6 = scalar_lea.vmem %s379_s28, 128  ;;  %p692_p5 = scmp.lt.s32.totalorder %s379_s28, %s379_s28 }
  0x5b   :  { %549 = vmatprep.subr.bf16.mxu1 %v723_v0  ;;  %p688_p4 = scmp.ne.s32.totalorder %s379_s28, %s687_s6  ;;  %p693_p6 = scmp.lt.s32.totalorder %s687_s6, %s687_s6 }
  0x5c   :  { %453 = vmatmul.mubr.msk.f32.vlgmr.msra.gmra.mrb[0].mxu0 %vm96_vm1, %v80_v26 }
  0x5d   :  { %522 = vmatprep.mubr.msk.f32.mxu0 %vm724_vm0, %v725_v1  ;;  %563 = vmatpush3.bf16.msra.mxu0 %v562_v42  ;;  %p694_p7 = por %p693_p6, %p692_p5 }
  0x5e   :  { %551 = vmatpush3.bf16.msra.mxu1 %v550_v29  ;;  %564 = vmatprep.subr.bf16.mxu0 %v723_v0 }
  0x5f   :  { %552 = vmatprep.subr.bf16.mxu1 %v723_v0  ;;  %p695_p8 = pnand %p694_p7, %p688_p4 }
  0x61   :  { %566 = vmatpush3.bf16.msra.mxu0 %v565_v44 }
  0x62   :  { %554 = vmatpush3.bf16.msra.mxu1 %v553_v32  ;;  %567 = vmatprep.subr.bf16.mxu0 %v723_v0 }
  0x63   :  { %555 = vmatprep.subr.bf16.mxu1 %v723_v0 }
  0x65   :  { %569 = vmatpush3.bf16.msra.mxu0 %v568_v47 }
  0x66   :  { %557 = vmatpush3.bf16.msra.mxu1 %v556_v35  ;;  %570 = vmatprep.subr.bf16.mxu0 %v723_v0 }
  0x67   :  { %558 = vmatprep.subr.bf16.mxu1 %v723_v0 }
  0x69   :  { %572 = vmatpush3.bf16.msra.mxu0 %v571_v50 }
  0x6a   :  { %560 = vmatpush3.bf16.msra.mxu1 %v559_v38  ;;  %573 = vmatprep.subr.bf16.mxu0 %v723_v0 }
  0x6d   :  { %575 = vmatpush3.bf16.msra.mxu0 %v574_v53 }
  0x6e   :  { %576 = vmatprep.subr.bf16.mxu0 %v723_v0 }
  0x71   :  { %578 = vmatpush3.bf16.msra.mxu0 %v577_v56 }
  0x72   :  { %579 = vmatprep.subr.bf16.mxu0 %v723_v0 }
  0x75   :  { %581 = vmatpush3.bf16.msra.mxu0 %v580_v59 }
  0x76   :  { %582 = vmatprep.subr.bf16.mxu0 %v723_v0 }
  0x79   :  { %584 = vmatpush3.bf16.msra.mxu0 %v583_v4 }
 0x12f   :  { %v166_v61 = vpop.f32.mrb[0].mxu0 }
 0x130   :  { %v167_v62 = vadd.f32 %v389_v60, %v166_v61  ;;  %v454_v63 = vpop.f32.mrb[1].mxu0 }
 0x132   :  { %v170_v1 = vmax.f32 %v167_v62, 0.0 }
 0x134   :  { %488 = vmatmul.mubr.f32.vlgmr.msra.gmra.mrb[0].mxu1 %v170_v1 }
 0x207   :  { %v260_v6 = vpop.f32.mrb[0].mxu1 }
 0x208   :  { %v261_v7 = vadd.f32 %v391_v5, %v260_v6  ;;  %v489_v0 = vpop.f32.mrb[1].mxu1 }
 0x20a   :  { %v264_v8 = vmax.f32 %v261_v7, 0.0 }
 0x20c   :  { %523 = vmatmul.mubr.f32.vlgmr.msra.gmra.mrb[2].mxu0 %v264_v8 }
 0x2df   :  { %v354_v12 = vpop.f32.mrb[2].mxu0 }
 0x2e0   :  { %v355_v13 = vadd.f32 %v392_v11, %v354_v12  ;;  %v524_v14 = vpop.f32.mrb[3].mxu0 }
 0x2e2   :  { %v361_v15 = vsel %vm360_vm2, %v355_v13, -1e+30 }
 0x2e3   :  { %362 = vmax.xlane.f32.xlu0 %v361_v15 }
 0x370   :  { %v363_v16 = vpop.xlane.xlu0 %362 }
 0x371   :  { %v364_v17 = vsub.f32 %v361_v15, %v363_v16 }
 0x373   :  { %v365_v18 = vmul.f32 1.442695, %v364_v17 }
 0x375   :  { %595 = vpow2.f32 %v365_v18 }
 0x37f   :  { %v596_v19 = vpop.eup %595 }
 0x380   :  { %367 = vadd.xlane.f32.xlu0 %v596_v19 }
 0x40d   :  { %v368_v20 = vpop.xlane.xlu0 %367 }
 0x40e   :  { %597 = vrcp.f32 %v368_v20 }
 0x418   :  { %v598_v21 = vpop.eup %597 }
 0x419   :  { %v370_v22 = vmul.f32 %v598_v21, %v596_v19 }
 0x41b   :  { %371 = vst [vmem:[#allocation10] sm:$0xff] %v370_v22 }
 0x41c   :  { %698 = shalt.err (!%p695_p8)
}
 0x41d   :  { %s699_s8 = scalar_lea.hbm %s875_s7, 128 }
 0x41e   :  { %p700_p9 = scmp.ne.s32.totalorder %s875_s7, %s699_s8  ;;  %p703_p10 = scmp.lt.u32.totalorder %s699_s8, %s875_s7 }
 0x420   :  { %p705_p11 = pnand %p703_p10, %p700_p9 }
 0x422   :  { %708 = shalt.err (!%p705_p11)
}
 0x423   :  { %381 = dma.vmem_to_hbm [thread:$0]  %s379_s28, 128, %s875_s7, [#allocation4]  }
 0x424   :  { %715 = dma.done.wait [#allocation4], 128  }
 0x425   :  { %716 = vsyncadd [#allocation4], 4294967168 }
 0x426   :  { %385 = vsyncpa [#allocation3], 1 }
 0x427   :  { %386 = vsyncpa [#allocation6], 1 }
 0x428   :  { %387 = vsyncpa [#allocation9], 1 }
 0x429   :  { %388 = vsyncpa [#allocation4], 1 }

</bundles_post_ra>
